<compile_context>
chip_gen: v7x
topology: tpu7x:2x2x1
jax: 0.10.0
libtpu: 0.0.40
codegen_flags: <defaults>
</compile_context>

<pallas_src>
import jax
import jax.numpy as jnp
from jax.experimental import pallas as pl
from jax.experimental.pallas import tpu as pltpu


def _hbm_copy_kernel(x_hbm, o_hbm):
    """Identity as one HBM->HBM DMA (no VMEM staging, no grid, no vld/vst slots)."""
    def body(sem):
        cp = pltpu.make_async_copy(x_hbm, o_hbm, sem)
        cp.start()
        cp.wait()
    pl.run_scoped(body, pltpu.SemaphoreType.DMA)


def _pallas_identity(x):
    """Shape/dtype-agnostic identity copy through the DMA engines."""
    return pl.pallas_call(
        _hbm_copy_kernel,
        out_shape=jax.ShapeDtypeStruct(x.shape, x.dtype),
        in_specs=[pl.BlockSpec(memory_space=pl.ANY)],   # raw HBM ref, no auto-DMA
        out_specs=pl.BlockSpec(memory_space=pl.ANY),
    )(x)


def base_model_forward(x, *, force_kernel: bool = False):
    """Concrete Pallas realization of BaseModel.forward (identity).

    Default: zero-cost short-circuit (returns x, no HBM traffic).
    force_kernel=True: materialize a fresh buffer via a single HBM->HBM DMA
    kernel (useful for exercising the Pallas path / when a distinct output
    buffer is required).
    """
    if not force_kernel:
        return x
    # Scalars / empty arrays have nothing worth DMA-ing; handle outside Pallas.
    if x.ndim == 0 or x.size == 0:
        return x
    return _pallas_identity(x)


class BaseModelJax:
    """JAX mirror of the PyTorch BaseModel helper methods."""

    def __init__(self):
        # Base class declares no parameters.
        self.params = {}

    def forward(self, x, *, force_kernel: bool = False):
        return base_model_forward(x, force_kernel=force_kernel)

    def get_alias(self) -> str:
        return "base"

    def get_num_params(self) -> int:
        return sum(int(p.size) for p in jax.tree_util.tree_leaves(self.params))

    def get_trainable_params(self) -> int:
        # No requires_grad distinction in this synthetic setup.
        return self.get_num_params()


if __name__ == "__main__":
    key = jax.random.PRNGKey(0)
    # Small NCHW input consistent with a conv-style model family.
    x = jax.random.normal(key, (2, 4, 16, 16), dtype=jnp.float32)

    model = BaseModelJax()

    # 1) Production path: short-circuit identity (no kernel, no HBM traffic).
    y_fast = jax.block_until_ready(model.forward(x))
    assert y_fast.shape == x.shape and y_fast.dtype == x.dtype
    assert bool(jnp.array_equal(y_fast, x)), "short-circuit identity mismatch"

    # 2) Kernel path: single HBM->HBM DMA copy.
    y = jax.block_until_ready(model.forward(x, force_kernel=True))
    assert y.shape == x.shape and y.dtype == x.dtype
    assert bool(jnp.array_equal(y, x)), "DMA identity mismatch"

    # 3) Robustness: awkward, non-(8,128)-aligned shape goes through the same
    #    DMA path (no whole-array VMEM fallback, no masked-store path).
    x_odd = jax.random.normal(jax.random.PRNGKey(0), (3, 5, 7), dtype=jnp.float32)
    y_odd = jax.block_until_ready(base_model_forward(x_odd, force_kernel=True))
    assert y_odd.shape == x_odd.shape and y_odd.dtype == x_odd.dtype
    assert bool(jnp.array_equal(y_odd, x_odd)), "odd-shape DMA identity mismatch"

    assert model.get_alias() == "base"
    assert model.get_num_params() == 0
    assert model.get_trainable_params() == 0

    print("KERNEL_OK")
</pallas_src>

<mosaic_0001>
module attributes {stable_mosaic.version = 11 : i64} {
  func.func @_hbm_copy_kernel(%arg0: memref<2x4x16x16xf32, #tpu.memory_space<any>>, %arg1: memref<2x4x16x16xf32, #tpu.memory_space<any>>) attributes {dimension_semantics = [], scalar_prefetch = 0 : i64, scratch_operands = 0 : i64, tpu.core_type = #tpu.core_type<tc>} {
    "tpu.region"() ({
      %0 = tpu.sem_alloc : memref<!tpu.dma_semaphore, #tpu.memory_space<semaphore_mem>>
      tpu.enqueue_dma source(%arg0 : memref<2x4x16x16xf32, #tpu.memory_space<any>>) target(%arg1 : memref<2x4x16x16xf32, #tpu.memory_space<any>>) target_semaphore(%0 : memref<!tpu.dma_semaphore, #tpu.memory_space<semaphore_mem>>)
      tpu.wait_dma2 semaphore(%0 : memref<!tpu.dma_semaphore, #tpu.memory_space<semaphore_mem>>) src(%arg0 : memref<2x4x16x16xf32, #tpu.memory_space<any>>) dst(%arg1 : memref<2x4x16x16xf32, #tpu.memory_space<any>>)
      tpu.yield
    }) : () -> ()
    return
  }
}

</mosaic_0001>

<bundles_post_ra>
// kernel: tpu_custom_call.1
= control target key start
LH: loop header
LB: loop body
LE: loop exit
PB: predicated region body
PF: predicated region fallthrough
CT: control target
= control target key end

     0   :  { %s29_s6 = smov [#allocation2]   ;;  %s30_s7 = smov [#allocation3]   ;;  %s48_s0 = inlined_call_operand.hbm [shape: f32[2,4,16,16], index: 0, kind: input, shape index: {}]   ;;  %s49_s1 = inlined_call_operand.hbm [shape: f32[2,4,16,16], index: 1, kind: output, shape index: {}]  }
   0x1   :  { %s31_s8 = smov 0  }
   0x2   :  { %18 = dma.general %s48_s0, 2048, %s49_s1, %s29_s6, %s30_s7, [#allocation4], %s31_s8, 0  }
   0x3   :  { %27 = dma.done.wait [#allocation2], 2048 }
   0x4   :  { %28 = vsyncadd [#allocation2], 4294965248 }

</bundles_post_ra>
